<compile_context>
chip_gen: v6e
topology: v6e:2x2x1
jax: 0.10.0
libtpu: 0.0.40
codegen_flags: <defaults>
</compile_context>

<pallas_src>
import functools

import jax
import jax.numpy as jnp
from jax import lax
from jax.experimental import pallas as pl
from jax.experimental.pallas import tpu as pltpu

LANE = 128  # TPU lane width; channel/class dims padded to this.


def _model_kernel(hw, patches_ref, wconv_ref, bconv_ref, wfc_ref, bfc_ref,
                  out_ref):
    # patches_ref: (NB*HW, K)  im2col rows for NB batch items (K unpadded)
    # wconv_ref:   (K, CP)     conv weights, pre-scaled by 1/(H*W)
    # bconv_ref:   (1, CP)     conv bias,    pre-scaled by 1/(H*W)
    # wfc_ref:     (CP, CP)    classifier weights (rows [:Cout], cols [:NC] live)
    # bfc_ref:     (1, CP)     classifier bias (cols [:NC] live)
    # out_ref:     (NB, CP)    lane-dense logits for this batch tile
    rows = patches_ref.shape[0]
    cp = out_ref.shape[1]
    nb = rows // hw

    conv = jnp.dot(patches_ref[...], wconv_ref[...],
                   preferred_element_type=jnp.float32)            # (NB*HW, CP)
    conv = jnp.maximum(conv + bconv_ref[...], 0.0)                # bias + ReLU

    # Global average pool: scale already folded into wconv/bconv, so a pure
    # sum over the H*W rows of each batch item (HW is a multiple of 8, so the
    # reshape is a clean sublane split).
    feat = jnp.sum(conv.reshape(nb, hw, cp), axis=1)              # (NB, CP)

    out = jnp.dot(feat, wfc_ref[...],
                  preferred_element_type=jnp.float32) + bfc_ref[...]
    out_ref[...] = out.astype(out_ref.dtype)


def prepare_params(w_conv, b_conv, w_fc, b_fc, spatial_size):
    """One-time parameter layout prep (hoisted out of the per-call path).

    Pads channel/class dims to 128 lanes and folds the 1/(H*W) global-average
    -pool scale into the conv weights and bias (valid: ReLU commutes with a
    positive scale), so pooling in the kernel is a pure sum.
    """
    KH, KW, Cin, Cout = w_conv.shape
    NC = w_fc.shape[1]
    K = KH * KW * Cin
    CP = ((max(Cout, NC) + LANE - 1) // LANE) * LANE
    inv = 1.0 / float(spatial_size)

    w_conv_p = jnp.zeros((K, CP), jnp.float32).at[:, :Cout].set(
        w_conv.reshape(K, Cout).astype(jnp.float32) * inv)
    b_conv_p = jnp.zeros((1, CP), jnp.float32).at[0, :Cout].set(
        b_conv.astype(jnp.float32) * inv)
    w_fc_p = jnp.zeros((CP, CP), jnp.float32).at[:Cout, :NC].set(
        w_fc.astype(jnp.float32))
    b_fc_p = jnp.zeros((1, CP), jnp.float32).at[0, :NC].set(
        b_fc.astype(jnp.float32))
    return w_conv_p, b_conv_p, w_fc_p, b_fc_p


@functools.partial(jax.jit, static_argnames=("kh", "kw", "num_classes"))
def model_forward(x_nchw, w_conv_p, b_conv_p, w_fc_p, b_fc_p, *,
                  kh, kw, num_classes):
    """x_nchw: (N, Cin, H, W) float32 -> logits (N, num_classes) float32."""
    N, Cin, H, W = x_nchw.shape
    K, CP = w_conv_p.shape
    HW = H * W

    # ---- wrapper-side layout plumbing (fused by XLA under jit) -------------
    # NCHW -> NHWC, 'same' padding, im2col into one UNPADDED (N*H*W, K) slab.
    # TODO(synk): accept NHWC input directly from the caller to drop the transpose.
    x_nhwc = jnp.transpose(x_nchw, (0, 2, 3, 1)).astype(jnp.float32)
    ph, pw = kh // 2, kw // 2
    x_pad = jnp.pad(x_nhwc, ((0, 0), (ph, ph), (pw, pw), (0, 0)))
    taps = [x_pad[:, ky:ky + H, kx:kx + W, :]
            for ky in range(kh) for kx in range(kw)]
    patches = jnp.concatenate(taps, axis=-1).reshape(N * HW, K)

    # Batch items per grid step: prefer >=8 output rows per block (unmasked
    # (8,128) store) when the batch allows it.
    nb = next(d for d in (8, 4, 2, 1) if N % d == 0)
    grid = (N // nb,)

    cost = pl.CostEstimate(
        flops=2 * N * HW * K * CP + 2 * N * CP * CP,
        transcendentals=0,
        bytes_accessed=(patches.size + K * CP + CP * CP + 2 * CP + N * CP) * 4,
    )

    out_padded = pl.pallas_call(
        functools.partial(_model_kernel, HW),
        out_shape=jax.ShapeDtypeStruct((N, CP), jnp.float32),
        grid_spec=pltpu.PrefetchScalarGridSpec(
            num_scalar_prefetch=0,
            grid=grid,
            in_specs=[
                pl.BlockSpec((nb * HW, K), lambda i: (i, 0)),   # patch tile
                pl.BlockSpec((K, CP), lambda i: (0, 0)),        # conv W
                pl.BlockSpec((1, CP), lambda i: (0, 0)),        # conv b
                pl.BlockSpec((CP, CP), lambda i: (0, 0)),       # fc W
                pl.BlockSpec((1, CP), lambda i: (0, 0)),        # fc b
            ],
            out_specs=pl.BlockSpec((nb, CP), lambda i: (i, 0)),
        ),
        compiler_params=pltpu.CompilerParams(
            dimension_semantics=("parallel",)),
        cost_estimate=cost,
    )(patches, w_conv_p, b_conv_p, w_fc_p, b_fc_p)

    # Slice the lane-padded logits back down to the real class count.
    return out_padded[:, :num_classes]


def _reference(x_nchw, w_conv, b_conv, w_fc, b_fc):
    # Pure-JAX reference (NHWC conv) for correctness checking.
    x = jnp.transpose(x_nchw, (0, 2, 3, 1))
    conv = lax.conv_general_dilated(
        x, w_conv, window_strides=(1, 1), padding="SAME",
        dimension_numbers=("NHWC", "HWIO", "NHWC"))
    conv = jnp.maximum(conv + b_conv, 0.0)
    feat = jnp.mean(conv, axis=(1, 2))             # (N, Cout)
    return feat @ w_fc + b_fc


if __name__ == "__main__":
    key = jax.random.PRNGKey(0)
    N, Cin, H, W = 2, 4, 16, 16
    Cout, NC = 8, 10

    k1, k2, k3, k4, k5 = jax.random.split(key, 5)
    x = jax.random.normal(k1, (N, Cin, H, W), dtype=jnp.float32)
    w_conv = 0.1 * jax.random.normal(k2, (3, 3, Cin, Cout), dtype=jnp.float32)
    b_conv = 0.1 * jax.random.normal(k3, (Cout,), dtype=jnp.float32)
    w_fc = 0.1 * jax.random.normal(k4, (Cout, NC), dtype=jnp.float32)
    b_fc = 0.1 * jax.random.normal(k5, (NC,), dtype=jnp.float32)

    # One-time parameter prep, hoisted out of the per-call path.
    params = prepare_params(w_conv, b_conv, w_fc, b_fc, H * W)

    out = jax.block_until_ready(
        model_forward(x, *params, kh=3, kw=3, num_classes=NC))

    ref = _reference(x, w_conv, b_conv, w_fc, b_fc)
    assert out.shape == (N, NC)
    assert jnp.allclose(out, ref, atol=1e-4, rtol=1e-4), \
        f"max abs err {jnp.max(jnp.abs(out - ref))}"

    print("KERNEL_OK")
</pallas_src>

<mosaic_0001>
module attributes {stable_mosaic.version = 11 : i64} {
  func.func @_model_kernel(%arg0: i32, %arg1: memref<512x36xf32, #tpu.memory_space<vmem>>, %arg2: memref<36x128xf32, #tpu.memory_space<vmem>>, %arg3: memref<1x128xf32, #tpu.memory_space<vmem>>, %arg4: memref<128x128xf32, #tpu.memory_space<vmem>>, %arg5: memref<1x128xf32, #tpu.memory_space<vmem>>, %arg6: memref<2x128xf32, #tpu.memory_space<vmem>>) attributes {dimension_semantics = [#tpu.dimension_semantics<parallel>], iteration_bounds = array<i64: 1>, scalar_prefetch = 0 : i64, scratch_operands = 0 : i64, tpu.core_type = #tpu.core_type<tc>, window_params = [{transform_indices = @transform_0, window_bounds = array<i64: 512, 36>}, {pipeline_mode = #tpu.pipeline_mode<synchronous>, transform_indices = @transform_1, window_bounds = array<i64: 36, 128>}, {pipeline_mode = #tpu.pipeline_mode<synchronous>, transform_indices = @transform_2, window_bounds = array<i64: 1, 128>}, {pipeline_mode = #tpu.pipeline_mode<synchronous>, transform_indices = @transform_3, window_bounds = array<i64: 128, 128>}, {pipeline_mode = #tpu.pipeline_mode<synchronous>, transform_indices = @transform_4, window_bounds = array<i64: 1, 128>}, {transform_indices = @transform_5, window_bounds = array<i64: 2, 128>}]} {
    %c0 = arith.constant 0 : index
    %c0_0 = arith.constant 0 : index
    %0 = vector.load %arg1[%c0, %c0_0] : memref<512x36xf32, #tpu.memory_space<vmem>>, vector<512x36xf32>
    %c0_1 = arith.constant 0 : index
    %c0_2 = arith.constant 0 : index
    %1 = vector.load %arg2[%c0_1, %c0_2] : memref<36x128xf32, #tpu.memory_space<vmem>>, vector<36x128xf32>
    %cst = arith.constant dense<0.000000e+00> : vector<512x128xf32>
    %2 = tpu.matmul %0, %1, %cst {dimension_numbers = #tpu.dot_dimension_numbers<[1], [0], [0], [1], [0, 0, 1, 1], [], []>} : vector<512x36xf32>, vector<36x128xf32>, vector<512x128xf32> -> vector<512x128xf32>
    %c0_3 = arith.constant 0 : index
    %c0_4 = arith.constant 0 : index
    %3 = vector.load %arg3[%c0_3, %c0_4] : memref<1x128xf32, #tpu.memory_space<vmem>>, vector<1x128xf32>
    %4 = vector.broadcast %3 : vector<1x128xf32> to vector<512x128xf32>
    %5 = arith.addf %2, %4 : vector<512x128xf32>
    %cst_5 = arith.constant 0.000000e+00 : f32
    %6 = vector.broadcast %cst_5 : f32 to vector<512x128xf32>
    %7 = arith.maximumf %5, %6 : vector<512x128xf32>
    %8 = vector.shape_cast %7 : vector<512x128xf32> to vector<2x256x128xf32>
    %cst_6 = arith.constant dense<0.000000e+00> : vector<2x128xf32>
    %9 = vector.multi_reduction <add>, %8, %cst_6 [1] : vector<2x256x128xf32> to vector<2x128xf32>
    %c0_7 = arith.constant 0 : index
    %c0_8 = arith.constant 0 : index
    %10 = vector.load %arg4[%c0_7, %c0_8] : memref<128x128xf32, #tpu.memory_space<vmem>>, vector<128x128xf32>
    %cst_9 = arith.constant dense<0.000000e+00> : vector<2x128xf32>
    %11 = tpu.matmul %9, %10, %cst_9 {dimension_numbers = #tpu.dot_dimension_numbers<[1], [0], [0], [1], [0, 0, 1, 1], [], []>} : vector<2x128xf32>, vector<128x128xf32>, vector<2x128xf32> -> vector<2x128xf32>
    %c0_10 = arith.constant 0 : index
    %c0_11 = arith.constant 0 : index
    %12 = vector.load %arg5[%c0_10, %c0_11] : memref<1x128xf32, #tpu.memory_space<vmem>>, vector<1x128xf32>
    %13 = vector.broadcast %12 : vector<1x128xf32> to vector<2x128xf32>
    %14 = arith.addf %11, %13 : vector<2x128xf32>
    %c0_12 = arith.constant 0 : index
    %c0_13 = arith.constant 0 : index
    %15 = vector.load %arg6[%c0_12, %c0_13] : memref<2x128xf32, #tpu.memory_space<vmem>>, vector<2x128xf32>
    tpu.vector_store %arg6[%c0_12, %c0_13], %14 {strides = array<i32>} : memref<2x128xf32, #tpu.memory_space<vmem>>, vector<2x128xf32>,
    return
  }
  func.func @transform_0(%arg0: i32) -> (i32, i32) {
    %c0_i32 = arith.constant 0 : i32
    %c0_i32_0 = arith.constant 0 : i32
    return %arg0, %c0_i32 : i32, i32
  }
  func.func @transform_1(%arg0: i32) -> (i32, i32) {
    %c0_i32 = arith.constant 0 : i32
    %c0_i32_0 = arith.constant 0 : i32
    %c0_i32_1 = arith.constant 0 : i32
    return %c0_i32, %c0_i32_0 : i32, i32
  }
  func.func @transform_2(%arg0: i32) -> (i32, i32) {
    %c0_i32 = arith.constant 0 : i32
    %c0_i32_0 = arith.constant 0 : i32
    %c0_i32_1 = arith.constant 0 : i32
    return %c0_i32, %c0_i32_0 : i32, i32
  }
  func.func @transform_3(%arg0: i32) -> (i32, i32) {
    %c0_i32 = arith.constant 0 : i32
    %c0_i32_0 = arith.constant 0 : i32
    %c0_i32_1 = arith.constant 0 : i32
    return %c0_i32, %c0_i32_0 : i32, i32
  }
  func.func @transform_4(%arg0: i32) -> (i32, i32) {
    %c0_i32 = arith.constant 0 : i32
    %c0_i32_0 = arith.constant 0 : i32
    %c0_i32_1 = arith.constant 0 : i32
    return %c0_i32, %c0_i32_0 : i32, i32
  }
  func.func @transform_5(%arg0: i32) -> (i32, i32) {
    %c0_i32 = arith.constant 0 : i32
    %c0_i32_0 = arith.constant 0 : i32
    return %arg0, %c0_i32 : i32, i32
  }
}

</mosaic_0001>

<bundles_post_ra>
// kernel: model_forward.1
= control target key start
LH: loop header
LB: loop body
LE: loop exit
PB: predicated region body
PF: predicated region fallthrough
CT: control target
= control target key end

     0   :  { %vm290_vm0 = vcmask 1043456   ;;  %vm97_vm1 = vcmask 293888   ;;  %s1752_s0 = inlined_call_operand.vmem [shape: f32[512,36], index: 0, kind: input, shape index: {}]   ;;  %s1753_s1 = inlined_call_operand.vmem [shape: f32[36,128], index: 1, kind: input, shape index: {}]   ;;  %s1754_s2 = inlined_call_operand.vmem [shape: f32[1,128], index: 2, kind: input, shape index: {}]   ;;  %s1755_s3 = inlined_call_operand.vmem [shape: f32[128,128], index: 3, kind: input, shape index: {}]   ;;  %s1756_s4 = inlined_call_operand.vmem [shape: f32[1,128], index: 4, kind: input, shape index: {}]   ;;  %s1757_s5 = inlined_call_operand.hbm [shape: f32[2,128], index: 5, kind: output, shape index: {}]  }
   0x1   :  { %v89_v0 = vld [vmem:[%s1753_s1 + $0x20] sm:$0xf]  ;;  %v88_v1 = vld [vmem:[%s1753_s1 + $0x18] sm:$0xff]  ;;  %v87_v3 = vld [vmem:[%s1753_s1 + $0x10] sm:$0xff] }
   0x2   :  { %1083 = vmatprep.subr.msk.mxu0 %vm290_vm0, %v89_v0  ;;  %v21_v2 = vld [vmem:[%s1752_s0] sm:$0xff]  ;;  %1224 = vmatprep.subr.msk.mxu1 %vm290_vm0, %v89_v0  ;;  %v86_v4 = vld [vmem:[%s1753_s1 + $0x8] sm:$0xff]  ;;  %v23_v7 = vld [vmem:[%s1752_s0 + $0x10] sm:$0xff] }
   0x3   :  { %1084 = vmatpush3.msk.msra.mxu0 %vm290_vm0, %v89_v0  ;;  %1093 = vmatprep.mubr.msk.f32.mxu0 %vm97_vm1, %v21_v2  ;;  %v85_v5 = vld [vmem:[%s1753_s1] sm:$0xff]  ;;  %v22_v6 = vld [vmem:[%s1752_s0 + $0x8] sm:$0xff]  ;;  %v24_v8 = vld [vmem:[%s1752_s0 + $0x18] sm:$0xff] }
   0x4   :  { %1085 = vmatprep.subr.mxu0 %v88_v1  ;;  %1229 = vmatpush3.msk.msra.mxu1 %vm290_vm0, %v89_v0  ;;  %v55_v9 = vld [vmem:[%s1752_s0 + $0x110] sm:$0xff]  ;;  %v25_v10 = vld [vmem:[%s1752_s0 + $0x20] sm:$0xff]  ;;  %v56_v11 = vld [vmem:[%s1752_s0 + $0x118] sm:$0xff] }
   0x5   :  { %1086 = vmatpush3.msra.mxu0 %v88_v1  ;;  %1225 = vmatprep.subr.mxu1 %v88_v1  ;;  %v57_v12 = vld [vmem:[%s1752_s0 + $0x120] sm:$0xff]  ;;  %v58_v13 = vld [vmem:[%s1752_s0 + $0x128] sm:$0xff]  ;;  %v59_v15 = vld [vmem:[%s1752_s0 + $0x130] sm:$0xff] }
   0x6   :  { %1087 = vmatprep.subr.mxu0 %v87_v3  ;;  %1230 = vmatpush3.msra.mxu1 %v88_v1  ;;  %v26_v14 = vld [vmem:[%s1752_s0 + $0x28] sm:$0xff]  ;;  %v27_v16 = vld [vmem:[%s1752_s0 + $0x30] sm:$0xff]  ;;  %v60_v17 = vld [vmem:[%s1752_s0 + $0x138] sm:$0xff] }
   0x7   :  { %1088 = vmatpush3.msra.mxu0 %v87_v3  ;;  %1226 = vmatprep.subr.mxu1 %v87_v3  ;;  %v28_v18 = vld [vmem:[%s1752_s0 + $0x38] sm:$0xff]  ;;  %v61_v19 = vld [vmem:[%s1752_s0 + $0x140] sm:$0xff]  ;;  %v62_v21 = vld [vmem:[%s1752_s0 + $0x148] sm:$0xff] }
   0x8   :  { %1089 = vmatprep.subr.mxu0 %v86_v4  ;;  %1231 = vmatpush3.msra.mxu1 %v87_v3  ;;  %v29_v20 = vld [vmem:[%s1752_s0 + $0x40] sm:$0xff] }
   0x9   :  { %1090 = vmatpush3.msra.mxu0 %v86_v4  ;;  %1227 = vmatprep.subr.mxu1 %v86_v4 }
   0xa   :  { %1091 = vmatprep.subr.mxu0 %v85_v5  ;;  %1232 = vmatpush3.msra.mxu1 %v86_v4 }
   0xb   :  { %1092 = vmatpush3.msra.mxu0 %v85_v5  ;;  %1228 = vmatprep.subr.mxu1 %v85_v5 }
   0xc   :  { %1094 = vmatmul.mubr.msk.f32.vlgmr.msra.gmra.mxu0 %vm97_vm1, %v22_v6  ;;  %1233 = vmatpush3.msra.mxu1 %v85_v5 }
   0xd   :  { %1096 = vmatprep.mubr.msk.f32.mxu0 %vm97_vm1, %v23_v7  ;;  %1144 = vmatprep.mubr.msk.f32.mxu1 %vm97_vm1, %v55_v9 }
   0xe   :  { %1145 = vmatmul.mubr.msk.f32.vlgmr.msra.gmra.mxu1 %vm97_vm1, %v56_v11 }
   0xf   :  { %1147 = vmatprep.mubr.msk.f32.mxu1 %vm97_vm1, %v57_v12 }
  0x10   :  { %1097 = vmatmul.mubr.msk.f32.gmra.mxu0 %vm97_vm1, %v24_v8 }
  0x11   :  { %1099 = vmatprep.mubr.msk.f32.mxu0 %vm97_vm1, %v25_v10 }
  0x12   :  { %1148 = vmatmul.mubr.msk.f32.gmra.mxu1 %vm97_vm1, %v58_v13 }
  0x13   :  { %1150 = vmatprep.mubr.msk.f32.mxu1 %vm97_vm1, %v59_v15 }
  0x14   :  { %1100 = vmatmul.mubr.msk.f32.gmra.mxu0 %vm97_vm1, %v26_v14 }
  0x15   :  { %1102 = vmatprep.mubr.msk.f32.mxu0 %vm97_vm1, %v27_v16 }
  0x16   :  { %1151 = vmatmul.mubr.msk.f32.gmra.mxu1 %vm97_vm1, %v60_v17 }
  0x17   :  { %1153 = vmatprep.mubr.msk.f32.mxu1 %vm97_vm1, %v61_v19 }
  0x18   :  { %1103 = vmatmul.mubr.msk.f32.gmra.mxu0 %vm97_vm1, %v28_v18 }
  0x19   :  { %10 = vsyncpa [#allocation3], 0  ;;  %1105 = vmatprep.mubr.msk.f32.mxu0 %vm97_vm1, %v29_v20  ;;  %v30_v22 = vld [vmem:[%s1752_s0 + $0x48] sm:$0xff]  ;;  %v63_v23 = vld [vmem:[%s1752_s0 + $0x150] sm:$0xff]  ;;  %v1259_v5 = vmov 0.0   ;;  %vm1260_vm2 = vmmov 0  }
  0x1a   :  { %v31_v24 = vld [vmem:[%s1752_s0 + $0x50] sm:$0xff]  ;;  %1154 = vmatmul.mubr.msk.f32.gmra.mxu1 %vm97_vm1, %v62_v21  ;;  %v64_v25 = vld [vmem:[%s1752_s0 + $0x158] sm:$0xff]  ;;  %v65_v27 = vld [vmem:[%s1752_s0 + $0x160] sm:$0xff]  ;;  %1189 = vmatprep.subr.mxu1 %v1259_v5  ;;  %vm842_vm3 = vcmask 1041409   ;;  %s1261_s7 = smov [#allocation2]  }
  0x1b   :  { %1156 = vmatprep.mubr.msk.f32.mxu1 %vm97_vm1, %v63_v23  ;;  %v32_v26 = vld [vmem:[%s1752_s0 + $0x58] sm:$0xff]  ;;  %v33_v28 = vld [vmem:[%s1752_s0 + $0x60] sm:$0xff]  ;;  %v66_v29 = vld [vmem:[%s1752_s0 + $0x168] sm:$0xff]  ;;  %s922_s8 = sshll.u32 %s1261_s7, 4  ;;  %s923_s8 = int_to_ptr.vmem [resolvable:$true] %s922_s8 }
  0x1c   :  { %1106 = vmatmul.mubr.msk.f32.gmra.mxu0 %vm97_vm1, %v30_v22  ;;  %v34_v30 = vld [vmem:[%s1752_s0 + $0x68] sm:$0xff]  ;;  %v67_v31 = vld [vmem:[%s1752_s0 + $0x170] sm:$0xff]  ;;  %v68_v33 = vld [vmem:[%s1752_s0 + $0x178] sm:$0xff]  ;;  %s1237_s1 = scalar_lea.vmem %s923_s8, 32  ;;  %p1242_p1 = scmp.lt.s32.totalorder %s923_s8, %s923_s8 }
  0x1d   :  { %1108 = vmatprep.mubr.msk.f32.mxu0 %vm97_vm1, %v31_v24  ;;  %v35_v32 = vld [vmem:[%s1752_s0 + $0x70] sm:$0xff]  ;;  %v36_v34 = vld [vmem:[%s1752_s0 + $0x78] sm:$0xff]  ;;  %v69_v35 = vld [vmem:[%s1752_s0 + $0x180] sm:$0xff]  ;;  %p1238_p0 = scmp.ne.s32.totalorder %s923_s8, %s1237_s1  ;;  %p1243_p2 = scmp.lt.s32.totalorder %s1237_s1, %s1237_s1 }
  0x1e   :  { %1157 = vmatmul.mubr.msk.f32.gmra.mxu1 %vm97_vm1, %v64_v25  ;;  %v37_v36 = vld [vmem:[%s1752_s0 + $0x80] sm:$0xff]  ;;  %v70_v37 = vld [vmem:[%s1752_s0 + $0x188] sm:$0xff]  ;;  %v71_v39 = vld [vmem:[%s1752_s0 + $0x190] sm:$0xff] }
  0x1f   :  { %1159 = vmatprep.mubr.msk.f32.mxu1 %vm97_vm1, %v65_v27  ;;  %v38_v38 = vld [vmem:[%s1752_s0 + $0x88] sm:$0xff]  ;;  %v39_v40 = vld [vmem:[%s1752_s0 + $0x90] sm:$0xff]  ;;  %v72_v41 = vld [vmem:[%s1752_s0 + $0x198] sm:$0xff]  ;;  %p1244_p3 = por %p1243_p2, %p1242_p1 }
  0x20   :  { %1109 = vmatmul.mubr.msk.f32.gmra.mxu0 %vm97_vm1, %v32_v26  ;;  %v40_v42 = vld [vmem:[%s1752_s0 + $0x98] sm:$0xff]  ;;  %v73_v43 = vld [vmem:[%s1752_s0 + $0x1a0] sm:$0xff]  ;;  %v74_v45 = vld [vmem:[%s1752_s0 + $0x1a8] sm:$0xff] }
  0x21   :  { %1111 = vmatprep.mubr.msk.f32.mxu0 %vm97_vm1, %v33_v28  ;;  %v41_v44 = vld [vmem:[%s1752_s0 + $0xa0] sm:$0xff]  ;;  %v42_v46 = vld [vmem:[%s1752_s0 + $0xa8] sm:$0xff]  ;;  %v75_v47 = vld [vmem:[%s1752_s0 + $0x1b0] sm:$0xff]  ;;  %p1245_p4 = pnand %p1244_p3, %p1238_p0 }
  0x22   :  { %1160 = vmatmul.mubr.msk.f32.gmra.mxu1 %vm97_vm1, %v66_v29  ;;  %v43_v48 = vld [vmem:[%s1752_s0 + $0xb0] sm:$0xff]  ;;  %v76_v49 = vld [vmem:[%s1752_s0 + $0x1b8] sm:$0xff]  ;;  %v77_v51 = vld [vmem:[%s1752_s0 + $0x1c0] sm:$0xff] }
  0x23   :  { %1162 = vmatprep.mubr.msk.f32.mxu1 %vm97_vm1, %v67_v31  ;;  %v44_v50 = vld [vmem:[%s1752_s0 + $0xb8] sm:$0xff]  ;;  %v45_v52 = vld [vmem:[%s1752_s0 + $0xc0] sm:$0xff]  ;;  %v78_v53 = vld [vmem:[%s1752_s0 + $0x1c8] sm:$0xff] }
  0x24   :  { %1112 = vmatmul.mubr.msk.f32.gmra.mxu0 %vm97_vm1, %v34_v30  ;;  %v46_v54 = vld [vmem:[%s1752_s0 + $0xc8] sm:$0xff]  ;;  %v79_v55 = vld [vmem:[%s1752_s0 + $0x1d0] sm:$0xff]  ;;  %v80_v57 = vld [vmem:[%s1752_s0 + $0x1d8] sm:$0xff] }
  0x25   :  { %1114 = vmatprep.mubr.msk.f32.mxu0 %vm97_vm1, %v35_v32  ;;  %v47_v56 = vld [vmem:[%s1752_s0 + $0xd0] sm:$0xff]  ;;  %v48_v58 = vld [vmem:[%s1752_s0 + $0xd8] sm:$0xff]  ;;  %v81_v59 = vld [vmem:[%s1752_s0 + $0x1e0] sm:$0xff] }
  0x26   :  { %1163 = vmatmul.mubr.msk.f32.gmra.mxu1 %vm97_vm1, %v68_v33  ;;  %v49_v60 = vld [vmem:[%s1752_s0 + $0xe0] sm:$0xff]  ;;  %v82_v61 = vld [vmem:[%s1752_s0 + $0x1e8] sm:$0xff]  ;;  %v83_v63 = vld [vmem:[%s1752_s0 + $0x1f0] sm:$0xff] }
  0x27   :  { %1165 = vmatprep.mubr.msk.f32.mxu1 %vm97_vm1, %v69_v35  ;;  %v50_v62 = vld [vmem:[%s1752_s0 + $0xe8] sm:$0xff]  ;;  %v51_v0 = vld [vmem:[%s1752_s0 + $0xf0] sm:$0xff]  ;;  %v84_v1 = vld [vmem:[%s1752_s0 + $0x1f8] sm:$0xff] }
  0x28   :  { %1115 = vmatmul.mubr.msk.f32.gmra.mxu0 %vm97_vm1, %v36_v34  ;;  %v52_v2 = vld [vmem:[%s1752_s0 + $0xf8] sm:$0xff]  ;;  %v53_v3 = vld [vmem:[%s1752_s0 + $0x100] sm:$0xff]  ;;  %v54_v4 = vld [vmem:[%s1752_s0 + $0x108] sm:$0xff] }
  0x29   :  { %1117 = vmatprep.mubr.msk.f32.mxu0 %vm97_vm1, %v37_v36  ;;  %v832_v6 = vld [vmem:[%s1755_s3 + $0x78] sm:$0xff]  ;;  %v831_v7 = vld [vmem:[%s1755_s3 + $0x70] sm:$0xff]  ;;  %v830_v8 = vld [vmem:[%s1755_s3 + $0x68] sm:$0xff] }
  0x2a   :  { %1166 = vmatmul.mubr.msk.f32.gmra.mxu1 %vm97_vm1, %v70_v37  ;;  %v829_v9 = vld [vmem:[%s1755_s3 + $0x60] sm:$0xff]  ;;  %v828_v10 = vld [vmem:[%s1755_s3 + $0x58] sm:$0xff]  ;;  %v827_v11 = vld [vmem:[%s1755_s3 + $0x50] sm:$0xff] }
  0x2b   :  { %1168 = vmatprep.mubr.msk.f32.mxu1 %vm97_vm1, %v71_v39  ;;  %1190 = vmatpush3.msra.mxu1 %v832_v6  ;;  %v826_v12 = vld [vmem:[%s1755_s3 + $0x48] sm:$0xff]  ;;  %v825_v13 = vld [vmem:[%s1755_s3 + $0x40] sm:$0xff]  ;;  %v824_v14 = vld [vmem:[%s1755_s3 + $0x38] sm:$0xff] }
  0x2c   :  { %1118 = vmatmul.mubr.msk.f32.gmra.mxu0 %vm97_vm1, %v38_v38  ;;  %1191 = vmatprep.subr.mxu1 %v1259_v5  ;;  %v823_v15 = vld [vmem:[%s1755_s3 + $0x30] sm:$0xff]  ;;  %v1606_v16 = vld [vmem:[%s1754_s2] ss:$0 sm:$0xff]  ;;  %v822_v26 = vld [vmem:[%s1755_s3 + $0x28] sm:$0xff] }
  0x2d   :  { %1120 = vmatprep.mubr.msk.f32.mxu0 %vm97_vm1, %v39_v40  ;;  %1192 = vmatpush3.msra.mxu1 %v831_v7  ;;  %v821_v32 = vld [vmem:[%s1755_s3 + $0x20] sm:$0xff]  ;;  %v820_v35 = vld [vmem:[%s1755_s3 + $0x18] sm:$0xff] }
  0x2e   :  { %1169 = vmatmul.mubr.msk.f32.gmra.mxu1 %vm97_vm1, %v72_v41  ;;  %1193 = vmatprep.subr.mxu1 %v1259_v5 }
  0x2f   :  { %1171 = vmatprep.mubr.msk.f32.mxu1 %vm97_vm1, %v73_v43  ;;  %1194 = vmatpush3.msra.mxu1 %v830_v8 }
  0x30   :  { %1121 = vmatmul.mubr.msk.f32.gmra.mxu0 %vm97_vm1, %v40_v42  ;;  %1195 = vmatprep.subr.mxu1 %v1259_v5  ;;  %v819_v42 = vld [vmem:[%s1755_s3 + $0x10] sm:$0xff] }
  0x31   :  { %1123 = vmatprep.mubr.msk.f32.mxu0 %vm97_vm1, %v41_v44  ;;  %1196 = vmatpush3.msra.mxu1 %v829_v9 }
  0x32   :  { %1172 = vmatmul.mubr.msk.f32.gmra.mxu1 %vm97_vm1, %v74_v45  ;;  %1197 = vmatprep.subr.mxu1 %v1259_v5  ;;  %v818_v45 = vld [vmem:[%s1755_s3 + $0x8] sm:$0xff] }
  0x33   :  { %1174 = vmatprep.mubr.msk.f32.mxu1 %vm97_vm1, %v75_v47  ;;  %1198 = vmatpush3.msra.mxu1 %v828_v10  ;;  %v817_v47 = vld [vmem:[%s1755_s3] sm:$0xff] }
  0x34   :  { %1124 = vmatmul.mubr.msk.f32.gmra.mxu0 %vm97_vm1, %v42_v46  ;;  %1199 = vmatprep.subr.mxu1 %v1259_v5 }
  0x35   :  { %1126 = vmatprep.mubr.msk.f32.mxu0 %vm97_vm1, %v43_v48  ;;  %1200 = vmatpush3.msra.mxu1 %v827_v11 }
  0x36   :  { %1175 = vmatmul.mubr.msk.f32.gmra.mxu1 %vm97_vm1, %v76_v49  ;;  %1201 = vmatprep.subr.mxu1 %v1259_v5 }
  0x37   :  { %1177 = vmatprep.mubr.msk.f32.mxu1 %vm97_vm1, %v77_v51  ;;  %1202 = vmatpush3.msra.mxu1 %v826_v12 }
  0x38   :  { %1127 = vmatmul.mubr.msk.f32.gmra.mxu0 %vm97_vm1, %v44_v50  ;;  %1203 = vmatprep.subr.mxu1 %v1259_v5 }
  0x39   :  { %1129 = vmatprep.mubr.msk.f32.mxu0 %vm97_vm1, %v45_v52  ;;  %1204 = vmatpush3.msra.mxu1 %v825_v13 }
  0x3a   :  { %1178 = vmatmul.mubr.msk.f32.gmra.mxu1 %vm97_vm1, %v78_v53  ;;  %1205 = vmatprep.subr.mxu1 %v1259_v5 }
  0x3b   :  { %1180 = vmatprep.mubr.msk.f32.mxu1 %vm97_vm1, %v79_v55  ;;  %1206 = vmatpush3.msra.mxu1 %v824_v14 }
  0x3c   :  { %1130 = vmatmul.mubr.msk.f32.gmra.mxu0 %vm97_vm1, %v46_v54  ;;  %1207 = vmatprep.subr.mxu1 %v1259_v5 }
  0x3d   :  { %1132 = vmatprep.mubr.msk.f32.mxu0 %vm97_vm1, %v47_v56  ;;  %1208 = vmatpush3.msra.mxu1 %v823_v15 }
  0x3e   :  { %1181 = vmatmul.mubr.msk.f32.gmra.mxu1 %vm97_vm1, %v80_v57  ;;  %1209 = vmatprep.subr.mxu1 %v1259_v5 }
  0x3f   :  { %1183 = vmatprep.mubr.msk.f32.mxu1 %vm97_vm1, %v81_v59  ;;  %1210 = vmatpush3.msra.mxu1 %v822_v26 }
  0x40   :  { %1133 = vmatmul.mubr.msk.f32.gmra.mxu0 %vm97_vm1, %v48_v58  ;;  %1211 = vmatprep.subr.mxu1 %v1259_v5 }
  0x41   :  { %1135 = vmatprep.mubr.msk.f32.mxu0 %vm97_vm1, %v49_v60  ;;  %1212 = vmatpush3.msra.mxu1 %v821_v32 }
  0x42   :  { %1184 = vmatmul.mubr.msk.f32.gmra.mxu1 %vm97_vm1, %v82_v61  ;;  %1213 = vmatprep.subr.mxu1 %v1259_v5 }
  0x43   :  { %1186 = vmatprep.mubr.msk.f32.mxu1 %vm97_vm1, %v83_v63  ;;  %1214 = vmatpush3.msra.mxu1 %v820_v35 }
  0x44   :  { %1136 = vmatmul.mubr.msk.f32.gmra.mxu0 %vm97_vm1, %v50_v62  ;;  %1215 = vmatprep.subr.mxu1 %v1259_v5 }
  0x45   :  { %1138 = vmatprep.mubr.msk.f32.mxu0 %vm97_vm1, %v51_v0  ;;  %1216 = vmatpush3.msra.mxu1 %v819_v42 }
  0x46   :  { %1187 = vmatmul.mubr.msk.f32.gmra.mxu1 %vm97_vm1, %v84_v1  ;;  %1217 = vmatprep.subr.mxu1 %v1259_v5 }
  0x47   :  { %1221 = vmatprep.mubr.msk.f32.mxu1 %vm1260_vm2, %v1259_v5  ;;  %1218 = vmatpush3.msra.mxu1 %v818_v45 }
  0x48   :  { %1139 = vmatmul.mubr.msk.f32.gmra.mxu0 %vm97_vm1, %v52_v2  ;;  %1219 = vmatprep.subr.mxu1 %v1259_v5 }
  0x49   :  { %1141 = vmatprep.mubr.msk.f32.mxu0 %vm97_vm1, %v53_v3  ;;  %1220 = vmatpush3.msra.mxu1 %v817_v47 }
  0x4c   :  { %1142 = vmatmul.mubr.msk.f32.gmra.mxu0 %vm97_vm1, %v54_v4 }
  0xcc   :  { %v1095_v17 = vpop.f32.mrf.mxu0 }
  0xcd   :  { %v366_v18 = vadd.f32 %v1095_v17, %v1606_v16 }
  0xce   :  { %v360_v19 = vpop.f32.mrf.mxu0  ;;  %v1611_v22 = vpop.f32.mrf.mxu1 }
  0xcf   :  { %v361_v20 = vadd.f32 %v1606_v16, %v360_v19  ;;  %v680_v23 = vmax.f32 %v366_v18, 0.0 }
  0xd0   :  { %v1098_v21 = vpop.f32.mrf.mxu0  ;;  %v1618_v31 = vpop.f32.mrf.mxu1 }
  0xd1   :  { %v679_v24 = vmax.f32 %v361_v20, 0.0  ;;  %v376_v28 = vadd.f32 %v1098_v21, %v1606_v16 }
  0xd2   :  { %v370_v25 = vpop.f32.mrf.mxu0  ;;  %v1630_v41 = vpop.f32.mrf.mxu1 }
  0xd3   :  { %v743_v27 = vadd.f32 %v680_v23, %v679_v24  ;;  %v371_v29 = vadd.f32 %v1606_v16, %v370_v25  ;;  %v682_v36 = vmax.f32 %v376_v28, 0.0 }
  0xd4   :  { %v1101_v30 = vpop.f32.mrf.mxu0  ;;  %v1646_v53 = vpop.f32.mrf.mxu1 }
  0xd5   :  { %v681_v33 = vmax.f32 %v371_v29, 0.0  ;;  %v386_v38 = vadd.f32 %v1101_v30, %v1606_v16 }
  0xd6   :  { %v380_v34 = vpop.f32.mrf.mxu0  ;;  %v1651_v62 = vpop.f32.mrf.mxu1 }
  0xd7   :  { %v744_v37 = vadd.f32 %v743_v27, %v681_v33  ;;  %v381_v39 = vadd.f32 %v1606_v16, %v380_v34  ;;  %v684_v48 = vmax.f32 %v386_v38, 0.0 }
  0xd8   :  { %v1104_v40 = vpop.f32.mrf.mxu0  ;;  %v1655_v7 = vpop.f32.mrf.mxu1 }
  0xd9   :  { %v683_v43 = vmax.f32 %v381_v39, 0.0  ;;  %v745_v44 = vadd.f32 %v744_v37, %v682_v36  ;;  %v396_v50 = vadd.f32 %v1104_v40, %v1606_v16 }
  0xda   :  { %v390_v46 = vpop.f32.mrf.mxu0  ;;  %v1659_v17 = vpop.f32.mrf.mxu1 }
  0xdb   :  { %v746_v49 = vadd.f32 %v745_v44, %v683_v43  ;;  %v391_v51 = vadd.f32 %v1606_v16, %v390_v46  ;;  %v686_v57 = vmax.f32 %v396_v50, 0.0 }
  0xdc   :  { %v1107_v52 = vpop.f32.mrf.mxu0  ;;  %v1663_v27 = vpop.f32.mrf.mxu1 }
  0xdd   :  { %v685_v54 = vmax.f32 %v391_v51, 0.0  ;;  %v747_v55 = vadd.f32 %v746_v49, %v684_v48  ;;  %v406_v59 = vadd.f32 %v1107_v52, %v1606_v16 }
  0xde   :  { %v400_v56 = vpop.f32.mrf.mxu0  ;;  %v1667_v37 = vpop.f32.mrf.mxu1 }
  0xdf   :  { %v748_v58 = vadd.f32 %v747_v55, %v685_v54  ;;  %v401_v60 = vadd.f32 %v1606_v16, %v400_v56  ;;  %v688_v2 = vmax.f32 %v406_v59, 0.0 }
  0xe0   :  { %v1110_v61 = vpop.f32.mrf.mxu0  ;;  %v1671_v47 = vpop.f32.mrf.mxu1 }
  0xe1   :  { %v687_v63 = vmax.f32 %v401_v60, 0.0  ;;  %v749_v0 = vadd.f32 %v748_v58, %v686_v57  ;;  %v416_v4 = vadd.f32 %v1110_v61, %v1606_v16 }
  0xe2   :  { %v410_v1 = vpop.f32.mrf.mxu0  ;;  %v1675_v57 = vpop.f32.mrf.mxu1 }
  0xe3   :  { %v750_v3 = vadd.f32 %v749_v0, %v687_v63  ;;  %v411_v5 = vadd.f32 %v1606_v16, %v410_v1  ;;  %v690_v11 = vmax.f32 %v416_v4, 0.0 }
  0xe4   :  { %v1113_v6 = vpop.f32.mrf.mxu0 }
  0xe5   :  { %v689_v8 = vmax.f32 %v411_v5, 0.0  ;;  %v751_v9 = vadd.f32 %v750_v3, %v688_v2  ;;  %v426_v13 = vadd.f32 %v1113_v6, %v1606_v16  ;;  %v1679_v3 = vpop.f32.mrf.mxu1 }
  0xe6   :  { %v420_v10 = vpop.f32.mrf.mxu0 }
  0xe7   :  { %v752_v12 = vadd.f32 %v751_v9, %v689_v8  ;;  %v421_v14 = vadd.f32 %v1606_v16, %v420_v10  ;;  %v692_v21 = vmax.f32 %v426_v13, 0.0  ;;  %v1683_v13 = vpop.f32.mrf.mxu1 }
  0xe8   :  { %v1116_v15 = vpop.f32.mrf.mxu0 }
  0xe9   :  { %v691_v18 = vmax.f32 %v421_v14, 0.0  ;;  %v753_v19 = vadd.f32 %v752_v12, %v690_v11  ;;  %v436_v24 = vadd.f32 %v1116_v15, %v1606_v16 }
  0xea   :  { %v430_v20 = vpop.f32.mrf.mxu0 }
  0xeb   :  { %v754_v23 = vadd.f32 %v753_v19, %v691_v18  ;;  %v431_v25 = vadd.f32 %v1606_v16, %v430_v20  ;;  %v694_v32 = vmax.f32 %v436_v24, 0.0 }
  0xec   :  { %v1119_v26 = vpop.f32.mrf.mxu0 }
  0xed   :  { %v693_v28 = vmax.f32 %v431_v25, 0.0  ;;  %v755_v29 = vadd.f32 %v754_v23, %v692_v21  ;;  %v446_v34 = vadd.f32 %v1119_v26, %v1606_v16  ;;  %v1687_v25 = vpop.f32.mrf.mxu1 }
  0xee   :  { %v440_v30 = vpop.f32.mrf.mxu0 }
  0xef   :  { %v756_v33 = vadd.f32 %v755_v29, %v693_v28  ;;  %v441_v35 = vadd.f32 %v1606_v16, %v440_v30  ;;  %v696_v42 = vmax.f32 %v446_v34, 0.0 }
  0xf0   :  { %v1122_v36 = vpop.f32.mrf.mxu0 }
  0xf1   :  { %v695_v38 = vmax.f32 %v441_v35, 0.0  ;;  %v757_v39 = vadd.f32 %v756_v33, %v694_v32  ;;  %v456_v44 = vadd.f32 %v1122_v36, %v1606_v16  ;;  %v1691_v36 = vpop.f32.mrf.mxu1 }
  0xf2   :  { %v450_v40 = vpop.f32.mrf.mxu0 }
  0xf3   :  { %v758_v43 = vadd.f32 %v757_v39, %v695_v38  ;;  %v451_v45 = vadd.f32 %v1606_v16, %v450_v40  ;;  %v698_v51 = vmax.f32 %v456_v44, 0.0 }
  0xf4   :  { %v1125_v46 = vpop.f32.mrf.mxu0 }
  0xf5   :  { %v697_v48 = vmax.f32 %v451_v45, 0.0  ;;  %v759_v49 = vadd.f32 %v758_v43, %v696_v42  ;;  %v466_v54 = vadd.f32 %v1125_v46, %v1606_v16 }
  0xf6   :  { %v460_v50 = vpop.f32.mrf.mxu0 }
  0xf7   :  { %v760_v52 = vadd.f32 %v759_v49, %v697_v48  ;;  %v461_v55 = vadd.f32 %v1606_v16, %v460_v50  ;;  %v700_v61 = vmax.f32 %v466_v54, 0.0  ;;  %v600_v48 = vpop.f32.mrf.mxu1 }
  0xf8   :  { %v1128_v56 = vpop.f32.mrf.mxu0 }
  0xf9   :  { %v699_v58 = vmax.f32 %v461_v55, 0.0  ;;  %v761_v59 = vadd.f32 %v760_v52, %v698_v51  ;;  %v476_v0 = vadd.f32 %v1128_v56, %v1606_v16 }
  0xfa   :  { %v470_v60 = vpop.f32.mrf.mxu0 }
  0xfb   :  { %v762_v63 = vadd.f32 %v761_v59, %v699_v58  ;;  %v471_v1 = vadd.f32 %v1606_v16, %v470_v60  ;;  %v702_v8 = vmax.f32 %v476_v0, 0.0  ;;  %v531_v58 = vadd.f32 %v1606_v16, %v1618_v31  ;;  %v1170_v59 = vpop.f32.mrf.mxu1 }
  0xfc   :  { %v1131_v2 = vpop.f32.mrf.mxu0 }
  0xfd   :  { %v701_v4 = vmax.f32 %v471_v1, 0.0  ;;  %v763_v5 = vadd.f32 %v762_v63, %v700_v61  ;;  %v486_v10 = vadd.f32 %v1131_v2, %v1606_v16  ;;  %v536_v63 = vadd.f32 %v1611_v22, %v1606_v16 }
  0xfe   :  { %v480_v6 = vpop.f32.mrf.mxu0  ;;  %v713_v2 = vmax.f32 %v531_v58, 0.0 }
  0xff   :  { %v764_v9 = vadd.f32 %v763_v5, %v701_v4  ;;  %v481_v11 = vadd.f32 %v1606_v16, %v480_v6  ;;  %v704_v19 = vmax.f32 %v486_v10, 0.0  ;;  %v541_v4 = vadd.f32 %v1606_v16, %v1646_v53  ;;  %v610_v5 = vpop.f32.mrf.mxu1 }
 0x100   :  { %v1134_v12 = vpop.f32.mrf.mxu0  ;;  %v714_v6 = vmax.f32 %v536_v63, 0.0  ;;  %v561_v53 = vadd.f32 %v1606_v16, %v1663_v27  ;;  %v581_v27 = vadd.f32 %v1606_v16, %v1679_v3  ;;  %v601_v3 = vadd.f32 %v1606_v16, %v600_v48 }
 0x101   :  { %v703_v14 = vmax.f32 %v481_v11, 0.0  ;;  %v765_v15 = vadd.f32 %v764_v9, %v702_v8  ;;  %v496_v21 = vadd.f32 %v1134_v12, %v1606_v16  ;;  %v546_v9 = vadd.f32 %v1630_v41, %v1606_v16  ;;  %v1173_v12 = vpop.f32.mrf.mxu1 }
 0x102   :  { %v490_v18 = vpop.f32.mrf.mxu0  ;;  %v715_v31 = vmax.f32 %v541_v4, 0.0  ;;  %v551_v11 = vadd.f32 %v1606_v16, %v1655_v7  ;;  %v566_v41 = vadd.f32 %v1659_v17, %v1606_v16  ;;  %v571_v7 = vadd.f32 %v1606_v16, %v1671_v47 }
 0x103   :  { %v766_v20 = vadd.f32 %v765_v15, %v703_v14  ;;  %v491_v23 = vadd.f32 %v1606_v16, %v490_v18  ;;  %v706_v30 = vmax.f32 %v496_v21, 0.0  ;;  %v716_v14 = vmax.f32 %v546_v9, 0.0 }
 0x104   :  { %v1137_v24 = vpop.f32.mrf.mxu0  ;;  %v556_v15 = vadd.f32 %v1651_v62, %v1606_v16  ;;  %v717_v18 = vmax.f32 %v551_v11, 0.0  ;;  %v576_v62 = vadd.f32 %v1667_v37, %v1606_v16  ;;  %v586_v17 = vadd.f32 %v1675_v57, %v1606_v16 }
 0x105   :  { %v705_v26 = vmax.f32 %v491_v23, 0.0  ;;  %v767_v28 = vadd.f32 %v766_v20, %v704_v19  ;;  %v506_v33 = vadd.f32 %v1137_v24, %v1606_v16  ;;  %v620_v20 = vpop.f32.mrf.mxu1  ;;  %v719_v24 = vmax.f32 %v561_v53, 0.0 }
 0x106   :  { %v500_v29 = vpop.f32.mrf.mxu0  ;;  %v718_v21 = vmax.f32 %v556_v15, 0.0  ;;  %v591_v47 = vadd.f32 %v1606_v16, %v1687_v25  ;;  %v596_v37 = vadd.f32 %v1683_v13, %v1606_v16  ;;  %v606_v57 = vadd.f32 %v1691_v36, %v1606_v16 }
 0x107   :  { %v768_v32 = vadd.f32 %v767_v28, %v705_v26  ;;  %v501_v34 = vadd.f32 %v1606_v16, %v500_v29  ;;  %v708_v42 = vmax.f32 %v506_v33, 0.0  ;;  %v1176_v28 = vpop.f32.mrf.mxu1  ;;  %v720_v29 = vmax.f32 %v566_v41, 0.0 }
 0x108   :  { %v1140_v35 = vpop.f32.mrf.mxu0  ;;  %v611_v25 = vadd.f32 %v1606_v16, %v610_v5  ;;  %v626_v4 = vadd.f32 %v1173_v12, %v1606_v16 }
 0x109   :  { %v707_v38 = vmax.f32 %v501_v34, 0.0  ;;  %v769_v39 = vadd.f32 %v768_v32, %v706_v30  ;;  %v516_v44 = vadd.f32 %v1140_v35, %v1606_v16  ;;  %v721_v32 = vmax.f32 %v571_v7, 0.0  ;;  %v630_v34 = vpop.f32.mrf.mxu1 }
 0x10a   :  { %v510_v40 = vpop.f32.mrf.mxu0  ;;  %v722_v35 = vmax.f32 %v576_v62, 0.0  ;;  %v729_v13 = vmax.f32 %v611_v25, 0.0  ;;  %v732_v5 = vmax.f32 %v626_v4, 0.0 }
 0x10b   :  { %v770_v43 = vadd.f32 %v769_v39, %v707_v38  ;;  %v511_v45 = vadd.f32 %v1606_v16, %v510_v40  ;;  %v710_v54 = vmax.f32 %v516_v44, 0.0  ;;  %v723_v39 = vmax.f32 %v581_v27, 0.0 }
 0x10c   :  { %v1143_v46 = vpop.f32.mrf.mxu0 }
 0x10d   :  { %v709_v49 = vmax.f32 %v511_v45, 0.0  ;;  %v771_v50 = vadd.f32 %v770_v43, %v708_v42  ;;  %v526_v51 = vadd.f32 %v1143_v46, %v1606_v16  ;;  %v1179_v42 = vpop.f32.mrf.mxu1  ;;  %v724_v43 = vmax.f32 %v586_v17, 0.0 }
 0x10e   :  { %v520_v52 = vpop.f32.mrf.mxu0  ;;  %v725_v45 = vmax.f32 %v591_v47, 0.0 }
 0x10f   :  { %v772_v55 = vadd.f32 %v771_v50, %v709_v49  ;;  %v521_v56 = vadd.f32 %v1606_v16, %v520_v52  ;;  %v712_v61 = vmax.f32 %v526_v51, 0.0  ;;  %v640_v49 = vpop.f32.mrf.mxu1  ;;  %v726_v50 = vmax.f32 %v596_v37, 0.0 }
 0x110   :  { %v727_v52 = vmax.f32 %v601_v3, 0.0 }
 0x111   :  { %v1699_v60 = vadd.f32 %v772_v55, %v710_v54  ;;  %v711_v0 = vmax.f32 %v521_v56, 0.0  ;;  %v1182_v55 = vpop.f32.mrf.mxu1  ;;  %v728_v56 = vmax.f32 %v606_v57, 0.0 }
 0x113   :  { %v780_v1 = vadd.f32 %v712_v61, %v711_v0  ;;  %v616_v61 = vadd.f32 %v1170_v59, %v1606_v16  ;;  %v621_v0 = vadd.f32 %v1606_v16, %v620_v20  ;;  %v650_v48 = vpop.f32.mrf.mxu1 }
 0x114   :  { %v651_v20 = vadd.f32 %v1606_v16, %v650_v48 }
 0x115   :  { %v781_v8 = vadd.f32 %v780_v1, %v713_v2  ;;  %v730_v1 = vmax.f32 %v616_v61, 0.0  ;;  %v1185_v9 = vpop.f32.mrf.mxu1 }
 0x117   :  { %v782_v10 = vadd.f32 %v781_v8, %v714_v6  ;;  %v731_v6 = vmax.f32 %v621_v0, 0.0  ;;  %v631_v8 = vadd.f32 %v1606_v16, %v630_v34 }
 0x119   :  { %v783_v22 = vadd.f32 %v782_v10, %v715_v31  ;;  %v636_v10 = vadd.f32 %v1176_v28, %v1606_v16  ;;  %v733_v11 = vmax.f32 %v631_v8, 0.0 }
 0x11b   :  { %v784_v19 = vadd.f32 %v783_v22, %v716_v14  ;;  %v641_v14 = vadd.f32 %v1606_v16, %v640_v49  ;;  %v660_v22 = vpop.f32.mrf.mxu1  ;;  %v734_v15 = vmax.f32 %v636_v10, 0.0 }
 0x11c   :  { %v661_v28 = vadd.f32 %v1606_v16, %v660_v22 }
 0x11d   :  { %v785_v23 = vadd.f32 %v784_v19, %v717_v18  ;;  %v646_v19 = vadd.f32 %v1179_v42, %v1606_v16  ;;  %v735_v53 = vmax.f32 %v641_v14, 0.0 }
 0x11e   :  { %v739_v27 = vmax.f32 %v661_v28, 0.0 }
 0x11f   :  { %v786_v26 = vadd.f32 %v785_v23, %v718_v21  ;;  %v1188_v21 = vpop.f32.mrf.mxu1  ;;  %v736_v23 = vmax.f32 %v646_v19, 0.0 }
 0x121   :  { %v787_v30 = vadd.f32 %v786_v26, %v719_v24  ;;  %v656_v24 = vadd.f32 %v1182_v55, %v1606_v16  ;;  %v737_v26 = vmax.f32 %v651_v20, 0.0 }
 0x123   :  { %v788_v33 = vadd.f32 %v787_v30, %v720_v29  ;;  %v670_v29 = vpop.f32.mrf.mxu1  ;;  %v738_v30 = vmax.f32 %v656_v24, 0.0 }
 0x125   :  { %v789_v38 = vadd.f32 %v788_v33, %v721_v32  ;;  %v666_v32 = vadd.f32 %v1185_v9, %v1606_v16  ;;  %v774_v33 = vrot.slane %v1699_v60, 4 }
 0x127   :  { %v790_v40 = vadd.f32 %v789_v38, %v722_v35  ;;  %v671_v35 = vadd.f32 %v1606_v16, %v670_v29  ;;  %v740_v38 = vmax.f32 %v666_v32, 0.0 }
 0x129   :  { %v791_v44 = vadd.f32 %v790_v40, %v723_v39  ;;  %v676_v39 = vadd.f32 %v1188_v21, %v1606_v16  ;;  %v775_v40 = vadd.f32 %v774_v33, %v1699_v60  ;;  %v741_v47 = vmax.f32 %v671_v35, 0.0  ;;  %v996_v16 = vld [vmem:[%s1756_s4] ss:$0 sm:$0xff] }
 0x12b   :  { %v792_v46 = vadd.f32 %v791_v44, %v724_v43  ;;  %v742_v43 = vmax.f32 %v676_v39, 0.0  ;;  %v776_v37 = vrot.slane %v775_v40, 2 }
 0x12d   :  { %v793_v51 = vadd.f32 %v792_v46, %v725_v45  ;;  %v777_v3 = vadd.f32 %v776_v37, %v775_v40 }
 0x12f   :  { %v794_v54 = vadd.f32 %v793_v51, %v726_v50  ;;  %v778_v51 = vrot.slane %v777_v3, 1 }
 0x131   :  { %v795_v58 = vadd.f32 %v794_v54, %v727_v52  ;;  %v779_v54 = vadd.f32 %v778_v51, %v777_v3 }
 0x133   :  { %v796_v63 = vadd.f32 %v795_v58, %v728_v56 }
 0x135   :  { %v797_v2 = vadd.f32 %v796_v63, %v729_v13 }
 0x137   :  { %v798_v36 = vadd.f32 %v797_v2, %v730_v1 }
 0x139   :  { %v799_v31 = vadd.f32 %v798_v36, %v731_v6 }
 0x13b   :  { %v800_v59 = vadd.f32 %v799_v31, %v732_v5 }
 0x13d   :  { %v801_v18 = vadd.f32 %v800_v59, %v733_v11 }
 0x13f   :  { %v802_v12 = vadd.f32 %v801_v18, %v734_v15 }
 0x141   :  { %v803_v41 = vadd.f32 %v802_v12, %v735_v53 }
 0x143   :  { %v804_v7 = vadd.f32 %v803_v41, %v736_v23 }
 0x145   :  { %v805_v62 = vadd.f32 %v804_v7, %v737_v26 }
 0x147   :  { %v806_v34 = vadd.f32 %v805_v62, %v738_v30 }
 0x149   :  { %v807_v17 = vadd.f32 %v806_v34, %v739_v27 }
 0x14b   :  { %v808_v42 = vadd.f32 %v807_v17, %v740_v38 }
 0x14d   :  { %v809_v44 = vadd.f32 %v808_v42, %v741_v47 }
 0x14f   :  { %v810_v45 = vadd.f32 %v809_v44, %v742_v43 }
 0x151   :  { %v811_v46 = vrot.slane %v810_v45, 4 }
 0x153   :  { %v812_v49 = vadd.f32 %v811_v46, %v810_v45 }
 0x155   :  { %v813_v50 = vrot.slane %v812_v49, 2 }
 0x157   :  { %v814_v57 = vadd.f32 %v813_v50, %v812_v49 }
 0x159   :  { %v815_v52 = vrot.slane %v814_v57, 1 }
 0x15b   :  { %v816_v25 = vadd.f32 %v815_v52, %v814_v57 }
 0x15d   :  { %v843_v55 = vsel %vm842_vm3, %v816_v25, %v779_v54 }
 0x15e   :  { %1222 = vmatmul.mubr.f32.vlgmr.msra.gmra.mxu1 %v843_v55 }
 0x21e   :  { %v911_v60 = vpop.f32.mrf.mxu1 }
 0x21f   :  { %v912_v56 = vadd.f32 %v996_v16, %v911_v60 }
 0x220   :  { %v1223_v58 = vpop.f32.mrf.mxu1 }
 0x221   :  { %915 = vst [vmem:[#allocation2] sm:$0x3] %v912_v56 }
 0x222   :  { %1248 = shalt.err (!%p1245_p4)
}
 0x223   :  { %925 = dma.vmem_to_hbm [thread:$0]  %s923_s8, 32, %s1757_s5, [#allocation3]  }
 0x224   :  { %1257 = dma.done.wait [#allocation3], 32  }
 0x225   :  { %1258 = vsyncadd [#allocation3], 4294967264 }
 0x226   :  { %929 = vsyncpa [#allocation3], 1 }

</bundles_post_ra>
